<compile_context>
chip_gen: v6e
topology: v6e:2x2x1
jax: 0.10.0
libtpu: 0.0.40
codegen_flags: <defaults>
</compile_context>

<pallas_src>
import functools
import math
from typing import Any, NamedTuple

import jax
import jax.numpy as jnp
from jax.experimental import pallas as pl
from jax.experimental.pallas import tpu as pltpu


def _round_up(x, m):
    return ((x + m - 1) // m) * m


def _cdiv(a, b):
    return (a + b - 1) // b


# --------------------------------------------------------------------------
# Tiling / VMEM plan (generation-aware)
# --------------------------------------------------------------------------
class _Plan(NamedTuple):
    Mr: int          # padded batch rows
    Kr: int          # padded in_channels (contraction)
    Nh: int          # padded out_channels (per re/im half), multiple of 128
    tn: int          # out-channel tile (lanes per half), divisor of Nh
    pt: int          # modes per grid step
    P_pad: int       # padded number of retained modes
    vmem_limit: int  # vmem_limit_bytes for CompilerParams


def _vmem_caps():
    cap = None
    try:
        info = pltpu.get_tpu_info()
        cap = int(getattr(info, "vmem_capacity_bytes", 0)) or None
    except Exception:
        cap = None
    if cap is None:
        cap = 64 << 20                       # conservative: v7x per-TC VMEM
    # Target working set: <= ~48 MiB, always leaving >= 16 MiB headroom.
    budget = max(16 << 20, min(48 << 20, cap - (16 << 20)))
    return cap, budget


def _make_plan(batch, cin, cout, n_modes, compute_dtype, max_block_modes=512):
    in_bytes = jnp.dtype(compute_dtype).itemsize
    align = 16 if in_bytes < 4 else 8        # dense sublane packing for bf16
    Mr = _round_up(max(batch, 1), align)
    Kr = _round_up(max(cin, 1), align)
    Nh = _round_up(max(cout, 1), 128)        # lane-dense halves, 128-aligned

    cap, budget = _vmem_caps()

    def io_bytes(tn):     # per-mode bytes that get double-buffered by the pipeline
        return in_bytes * (2 * Mr * Kr + Kr * 2 * tn) + 4 * Mr * 2 * tn

    def tmp_bytes(tn):    # per-mode f32 in-kernel temporaries (matmul result + combine)
        return 4 * (2 * Mr) * (2 * tn) * 2

    # Output-channel tile: largest divisor of Nh (multiple of 128) whose minimal
    # (pt = 8) double-buffered working set fits the budget.
    tn_cands = [d for d in range(Nh, 0, -128) if Nh % d == 0]
    tn = tn_cands[-1]
    for cand in tn_cands:
        if 8 * (2 * io_bytes(cand) + tmp_bytes(cand)) <= budget:
            tn = cand
            break

    denom = 2 * io_bytes(tn) + tmp_bytes(tn)
    pt = max(8, (budget // denom) // 8 * 8)
    # keep >= ~4 grid steps along the mode axis (pipelining + both v7x TCs)
    pt = min(pt, max_block_modes, _round_up(_cdiv(n_modes, 4), 8))
    pt = max(pt, 8)
    P_pad = _round_up(n_modes, pt)

    working = pt * denom
    vmem_limit = max(working + (12 << 20), 32 << 20)
    vmem_limit = min(vmem_limit, max(cap - (4 << 20), working + (2 << 20)))
    vmem_limit = int(min(vmem_limit, cap))
    return _Plan(Mr, Kr, Nh, tn, pt, P_pad, vmem_limit)


class SpectralKernelParams(NamedTuple):
    w_packed: jax.Array      # (P_pad, Kr, 2*Nh), chunk-pair layout, compute_dtype
    in_channels: int
    out_channels: int
    kernel_size_Y: int
    kernel_size_X: int
    batch: int
    n_modes: int
    plan: _Plan
    compute_dtype: Any


# --------------------------------------------------------------------------
# Pallas kernel: complex einsum 'bixy,ioxy->boxy' as a mode-batched MXU matmul
# --------------------------------------------------------------------------
def _spectral_kernel(x_ref, w_ref, o_ref, *, mr, tn):
    """Per mode tile:
         x_ref: (pt, 2*Mr, Kr)   rows [0,Mr)=Re(x), rows [Mr,2Mr)=Im(x)
         w_ref: (pt, Kr, 2*tn)   lanes [0,tn)=Re(w chunk), [tn,2tn)=Im(w chunk)
         o_ref: (pt, Mr, 2*tn)   lanes [0,tn)=Re(out),     [tn,2tn)=Im(out)
    One batched MXU matmul (f32 accumulation) + VPU combine on 128-aligned
    lane slices realizes the complex multiply without duplicating weights."""
    y = jax.lax.dot_general(
        x_ref[...], w_ref[...],
        dimension_numbers=(((2,), (1,)), ((0,), (0,))),   # batch over modes
        preferred_element_type=jnp.float32,
    )                                                      # (pt, 2*Mr, 2*tn) f32
    a = y[:, :mr, :]          # Re(x) @ [wr | wi]
    c = y[:, mr:, :]          # Im(x) @ [wr | wi]
    out_r = a[:, :, :tn] - c[:, :, tn:]                    # Re: xr*wr - xi*wi
    out_i = a[:, :, tn:] + c[:, :, :tn]                    # Im: xr*wi + xi*wr
    o_ref[...] = jnp.concatenate([out_r, out_i], axis=-1).astype(o_ref.dtype)


# --------------------------------------------------------------------------
# Weight packing (done ONCE per parameter set — hoisted out of the forward)
# --------------------------------------------------------------------------
def pack_spectral_weights(weights, batch_size, *, compute_dtype=jnp.bfloat16,
                          max_block_modes=512):
    """Build the kernel-ready weight layout once (weights are parameters)."""
    Cin, Cout, kY, kX = weights.shape
    P = kY * kX
    plan = _make_plan(batch_size, Cin, Cout, P, compute_dtype, max_block_modes)
    nb = plan.Nh // plan.tn

    wr = jnp.transpose(jnp.real(weights).reshape(Cin, Cout, P), (2, 0, 1))
    wi = jnp.transpose(jnp.imag(weights).reshape(Cin, Cout, P), (2, 0, 1))
    pad = ((0, plan.P_pad - P), (0, plan.Kr - Cin), (0, plan.Nh - Cout))
    wr = jnp.pad(wr.astype(jnp.float32), pad).reshape(plan.P_pad, plan.Kr, nb, plan.tn)
    wi = jnp.pad(wi.astype(jnp.float32), pad).reshape(plan.P_pad, plan.Kr, nb, plan.tn)
    w2 = jnp.stack([wr, wi], axis=3).reshape(plan.P_pad, plan.Kr, 2 * plan.Nh)
    w2 = w2.astype(compute_dtype)
    return SpectralKernelParams(w_packed=w2, in_channels=Cin, out_channels=Cout,
                                kernel_size_Y=kY, kernel_size_X=kX,
                                batch=batch_size, n_modes=P, plan=plan,
                                compute_dtype=compute_dtype)


# --------------------------------------------------------------------------
# torch.einsum('bixy,ioxy->boxy') for complex tensors, via Pallas/MXU
# --------------------------------------------------------------------------
def compl_mul2d_pallas(x_ft, params: SpectralKernelParams):
    B, Cin, Y, X = x_ft.shape
    P = Y * X
    pln = params.plan
    Cout = params.out_channels
    assert B == params.batch and Cin == params.in_channels and P == params.n_modes

    # Pack x mode-major: rows [0,Mr)=Re, rows [Mr,2Mr)=Im; zero-pad.
    xr = jnp.real(x_ft).reshape(B, Cin, P)
    xi = jnp.imag(x_ft).reshape(B, Cin, P)
    x2 = jnp.transpose(jnp.stack([xr, xi], axis=0), (3, 0, 1, 2))   # (P,2,B,Cin)
    x2 = jnp.pad(x2.astype(jnp.float32),
                 ((0, pln.P_pad - P), (0, 0), (0, pln.Mr - B), (0, pln.Kr - Cin)))
    x2 = x2.reshape(pln.P_pad, 2 * pln.Mr, pln.Kr).astype(params.compute_dtype)

    nb = pln.Nh // pln.tn
    grid = (pln.P_pad // pln.pt, nb)
    in_bytes = jnp.dtype(params.compute_dtype).itemsize

    kern = functools.partial(_spectral_kernel, mr=pln.Mr, tn=pln.tn)
    out = pl.pallas_call(
        kern,
        out_shape=jax.ShapeDtypeStruct((pln.P_pad, pln.Mr, 2 * pln.Nh), jnp.float32),
        grid_spec=pltpu.PrefetchScalarGridSpec(
            num_scalar_prefetch=0,
            grid=grid,
            in_specs=[
                pl.BlockSpec((pln.pt, 2 * pln.Mr, pln.Kr), lambda p, j: (p, 0, 0)),
                pl.BlockSpec((pln.pt, pln.Kr, 2 * pln.tn), lambda p, j: (p, 0, j)),
            ],
            out_specs=pl.BlockSpec((pln.pt, pln.Mr, 2 * pln.tn), lambda p, j: (p, 0, j)),
        ),
        compiler_params=pltpu.CompilerParams(
            dimension_semantics=("parallel", "arbitrary"),   # modes shard over TCs
            vmem_limit_bytes=pln.vmem_limit,
        ),
        cost_estimate=pl.CostEstimate(
            flops=2 * pln.P_pad * (2 * pln.Mr) * pln.Kr * (2 * pln.Nh),
            transcendentals=0,
            bytes_accessed=in_bytes * pln.P_pad * (2 * pln.Mr * pln.Kr
                                                   + pln.Kr * 2 * pln.Nh)
                           + 4 * pln.P_pad * pln.Mr * 2 * pln.Nh,
        ),
    )(x2, params.w_packed)

    # Unpack chunk-pair lanes -> complex; strip mode/batch/channel padding.
    out = out.reshape(pln.P_pad, pln.Mr, nb, 2, pln.tn)
    out_r = out[:, :, :, 0, :].reshape(pln.P_pad, pln.Mr, pln.Nh)[:P, :B, :Cout]
    out_i = out[:, :, :, 1, :].reshape(pln.P_pad, pln.Mr, pln.Nh)[:P, :B, :Cout]
    out_c = (out_r + 1j * out_i).astype(jnp.complex64)
    return jnp.transpose(out_c, (1, 2, 0)).reshape(B, Cout, Y, X)


# --------------------------------------------------------------------------
# Parameter construction (Spectral_weights.__init__ + get_weight)
# --------------------------------------------------------------------------
def build_spectral_weights(key, in_channels, out_channels, modes1, modes2):
    """Deterministic kaiming_uniform_(a=sqrt(5))-style init, then assembly."""
    kY = 2 * modes1 - 1
    kX = modes2
    k = jax.random.split(key, 5)

    def init_complex(kr, ki, shape):
        fan_in = shape[1] * shape[2] * shape[3]
        bound = 1.0 / math.sqrt(fan_in)
        re = jax.random.uniform(kr, shape, jnp.float32, -bound, bound)
        im = jax.random.uniform(ki, shape, jnp.float32, -bound, bound)
        return (re + 1j * im).astype(jnp.complex64)

    y0_modes = init_complex(k[0], k[1], (in_channels, out_channels, modes1 - 1, 1))
    yposx_modes = init_complex(k[2], k[3], (in_channels, out_channels, kY, kX - 1))

    bound00 = 1.0 / math.sqrt(out_channels * 1 * 1)
    w00 = jax.random.uniform(k[4], (in_channels, out_channels, 1, 1),
                             jnp.float32, -bound00, bound00)

    wcol = jnp.concatenate(
        [y0_modes, w00.astype(jnp.complex64),
         jnp.conj(jnp.flip(y0_modes, axis=-2))], axis=-2)
    weights = jnp.concatenate([wcol, yposx_modes], axis=-1)   # (in, out, kY, kX)
    return weights


# --------------------------------------------------------------------------
# SpectralConv2d.forward
# --------------------------------------------------------------------------
def spectral_conv2d_forward(x, params: SpectralKernelParams, modes1, modes2):
    B, Cin, H, W = x.shape
    Cout = params.out_channels

    freq0_y = H // 2   # index of zero frequency after fftshift(fftfreq(H))

    x_ft = jnp.fft.fftshift(jnp.fft.rfft2(x), axes=-2)          # (B,Cin,H,W//2+1)
    x_ft_sl = x_ft[..., freq0_y - modes1 + 1: freq0_y + modes1, :modes2]

    out_sl = compl_mul2d_pallas(x_ft_sl, params)                 # (B,Cout,2m1-1,m2)

    out_ft = jnp.zeros((B, Cout, H, W // 2 + 1), dtype=jnp.complex64)
    out_ft = out_ft.at[..., freq0_y - modes1 + 1: freq0_y + modes1,
                       :modes2].set(out_sl)

    y = jnp.fft.irfft2(jnp.fft.ifftshift(out_ft, axes=-2), s=(H, W))
    return y.astype(jnp.float32)


# --------------------------------------------------------------------------
if __name__ == "__main__":
    B, Cin, Cout, H, W = 2, 4, 4, 16, 16
    modes1, modes2 = 4, 4

    key = jax.random.PRNGKey(0)
    kx, kw = jax.random.split(key)

    x = jax.random.normal(kx, (B, Cin, H, W), dtype=jnp.float32)
    weights = build_spectral_weights(kw, Cin, Cout, modes1, modes2)

    # Kernel-ready weight layouts, built ONCE (hoisted out of the forward).
    params_f32 = pack_spectral_weights(weights, B, compute_dtype=jnp.float32)
    params_bf16 = pack_spectral_weights(weights, B, compute_dtype=jnp.bfloat16)

    # f32 path: matches the PyTorch reference semantics.
    out = spectral_conv2d_forward(x, params_f32, modes1, modes2)
    out = jax.block_until_ready(out)
    assert out.shape == (B, Cout, H, W), out.shape

    # --- checks -----------------------------------------------------------
    freq0_y = H // 2
    x_ft = jnp.fft.fftshift(jnp.fft.rfft2(x), axes=-2)
    x_ft_sl = x_ft[..., freq0_y - modes1 + 1: freq0_y + modes1, :modes2]
    ref_sl = jnp.einsum('bixy,ioxy->boxy', x_ft_sl, weights)

    got_f32 = compl_mul2d_pallas(x_ft_sl, params_f32)
    if not bool(jnp.allclose(got_f32, ref_sl, atol=1e-4, rtol=1e-4)):
        raise AssertionError("Pallas complex-mul (f32) mismatch vs reference")

    # bf16 fast path: compare against a bf16-rounded-operand reference
    # (operands rounded to bf16; products/accumulation in f32 are then exact).
    def _bf16_round_c(z):
        return (jnp.real(z).astype(jnp.bfloat16).astype(jnp.float32)
                + 1j * jnp.imag(z).astype(jnp.bfloat16).astype(jnp.float32))
    ref_bf = jnp.einsum('bixy,ioxy->boxy', _bf16_round_c(x_ft_sl),
                        _bf16_round_c(weights))
    got_bf16 = jax.block_until_ready(compl_mul2d_pallas(x_ft_sl, params_bf16))
    if not bool(jnp.allclose(got_bf16, ref_bf, atol=1e-2, rtol=1e-2)):
        raise AssertionError("Pallas complex-mul (bf16) mismatch vs reference")

    # end-to-end check against a pure-JAX forward using the einsum reference
    out_ft_ref = jnp.zeros((B, Cout, H, W // 2 + 1), dtype=jnp.complex64)
    out_ft_ref = out_ft_ref.at[..., freq0_y - modes1 + 1: freq0_y + modes1,
                               :modes2].set(ref_sl)
    y_ref = jnp.fft.irfft2(jnp.fft.ifftshift(out_ft_ref, axes=-2), s=(H, W))
    if not bool(jnp.allclose(out, y_ref, atol=1e-4, rtol=1e-4)):
        raise AssertionError("SpectralConv2d forward mismatch vs reference")

    print("KERNEL_OK")
</pallas_src>

<mosaic_0001>
module attributes {stable_mosaic.version = 11 : i64} {
  func.func @_spectral_kernel(%arg0: i32, %arg1: i32, %arg2: memref<8x16x8xf32, #tpu.memory_space<vmem>>, %arg3: memref<8x8x256xf32, #tpu.memory_space<vmem>>, %arg4: memref<8x8x256xf32, #tpu.memory_space<vmem>>) attributes {dimension_semantics = [#tpu.dimension_semantics<parallel>, #tpu.dimension_semantics<arbitrary>], iteration_bounds = array<i64: 4, 1>, scalar_prefetch = 0 : i64, scratch_operands = 0 : i64, tpu.core_type = #tpu.core_type<tc>, window_params = [{transform_indices = @transform_0, window_bounds = array<i64: 8, 16, 8>}, {transform_indices = @transform_1, window_bounds = array<i64: 8, 8, 256>}, {transform_indices = @transform_2, window_bounds = array<i64: 8, 8, 256>}]} {
    %c0 = arith.constant 0 : index
    %c0_0 = arith.constant 0 : index
    %c0_1 = arith.constant 0 : index
    %0 = vector.load %arg2[%c0, %c0_0, %c0_1] : memref<8x16x8xf32, #tpu.memory_space<vmem>>, vector<8x16x8xf32>
    %c0_2 = arith.constant 0 : index
    %c0_3 = arith.constant 0 : index
    %c0_4 = arith.constant 0 : index
    %1 = vector.load %arg3[%c0_2, %c0_3, %c0_4] : memref<8x8x256xf32, #tpu.memory_space<vmem>>, vector<8x8x256xf32>
    %cst = arith.constant dense<0.000000e+00> : vector<8x16x256xf32>
    %2 = tpu.matmul %0, %1, %cst {dimension_numbers = #tpu.dot_dimension_numbers<[2], [1], [1], [2], [0, 0, 0, 1, 1, 2], [0], [0]>} : vector<8x16x8xf32>, vector<8x8x256xf32>, vector<8x16x256xf32> -> vector<8x16x256xf32>
    %3 = vector.extract_strided_slice %2 {offsets = [0, 0, 0], sizes = [8, 8, 256], strides = [1, 1, 1]} : vector<8x16x256xf32> to vector<8x8x256xf32>
    %4 = vector.extract_strided_slice %2 {offsets = [0, 8, 0], sizes = [8, 8, 256], strides = [1, 1, 1]} : vector<8x16x256xf32> to vector<8x8x256xf32>
    %5 = vector.extract_strided_slice %3 {offsets = [0, 0, 0], sizes = [8, 8, 128], strides = [1, 1, 1]} : vector<8x8x256xf32> to vector<8x8x128xf32>
    %6 = vector.extract_strided_slice %4 {offsets = [0, 0, 128], sizes = [8, 8, 128], strides = [1, 1, 1]} : vector<8x8x256xf32> to vector<8x8x128xf32>
    %7 = arith.subf %5, %6 : vector<8x8x128xf32>
    %8 = vector.extract_strided_slice %3 {offsets = [0, 0, 128], sizes = [8, 8, 128], strides = [1, 1, 1]} : vector<8x8x256xf32> to vector<8x8x128xf32>
    %9 = vector.extract_strided_slice %4 {offsets = [0, 0, 0], sizes = [8, 8, 128], strides = [1, 1, 1]} : vector<8x8x256xf32> to vector<8x8x128xf32>
    %10 = arith.addf %8, %9 : vector<8x8x128xf32>
    %11 = tpu.concatenate %7, %10 in 2 : vector<8x8x128xf32>, vector<8x8x128xf32> -> vector<8x8x256xf32>
    %c0_5 = arith.constant 0 : index
    %c0_6 = arith.constant 0 : index
    %c0_7 = arith.constant 0 : index
    %12 = vector.load %arg4[%c0_5, %c0_6, %c0_7] : memref<8x8x256xf32, #tpu.memory_space<vmem>>, vector<8x8x256xf32>
    tpu.vector_store %arg4[%c0_5, %c0_6, %c0_7], %11 {strides = array<i32>} : memref<8x8x256xf32, #tpu.memory_space<vmem>>, vector<8x8x256xf32>,
    return
  }
  func.func @transform_0(%arg0: i32, %arg1: i32) -> (i32, i32, i32) {
    %c0_i32 = arith.constant 0 : i32
    %c0_i32_0 = arith.constant 0 : i32
    %c0_i32_1 = arith.constant 0 : i32
    return %arg0, %c0_i32, %c0_i32_0 : i32, i32, i32
  }
  func.func @transform_1(%arg0: i32, %arg1: i32) -> (i32, i32, i32) {
    %c0_i32 = arith.constant 0 : i32
    %c0_i32_0 = arith.constant 0 : i32
    return %arg0, %c0_i32, %arg1 : i32, i32, i32
  }
  func.func @transform_2(%arg0: i32, %arg1: i32) -> (i32, i32, i32) {
    %c0_i32 = arith.constant 0 : i32
    %c0_i32_0 = arith.constant 0 : i32
    return %arg0, %c0_i32, %arg1 : i32, i32, i32
  }
}

</mosaic_0001>

<bundles_post_ra>
// kernel: tpu_custom_call.1
= control target key start
LH: loop header
LB: loop body
LE: loop exit
PB: predicated region body
PF: predicated region fallthrough
CT: control target
= control target key end

     0   :  { %7 = vsyncpa [#allocation3], 0  ;;  %s1441_s0 = inlined_call_operand.vmem [shape: f32[32,16,8], index: 0, kind: input, shape index: {}]   ;;  %s1442_s1 = inlined_call_operand.vmem [shape: f32[32,8,256], index: 1, kind: input, shape index: {}]   ;;  %s1443_s2 = inlined_call_operand.hbm [shape: f32[32,8,256], index: 2, kind: output, shape index: {}]  }
   0x1   :  { %9 = vsyncpa [#allocation3 + $0x1], 0  ;;  %s1234_s9 = smov 0   ;;  %s1236_s10 = smov 0  }
   0x2   :  { %s1238_s11 = smov 0   ;;  %s1240_s12 = smov 0  }
   0x3   :  { %s1242_s13 = smov 0   ;;  %s1244_s14 = smov 0  }
   0x4 LB: > { %s1041_s15 = sadd.s32 4294967295, %s1213_s14   ;;  %s1042_s16 = sadd.s32 4294967294, %s1213_s14   ;;  %s1213_s14 = sphi %s1244_s14, %s15_s14   ;;  %s1209_s13 = sphi %s1242_s13, %s1450_s13   ;;  %s1205_s12 = sphi %s1240_s12, %s1449_s12   ;;  %s1201_s11 = sphi %s1238_s11, %s1448_s11   ;;  %s1197_s10 = sphi %s1236_s10, %s1447_s10   ;;  %s1193_s9 = sphi %s1234_s9, %s1446_s9  }
   0x5   : > { %s27_s17 = sadd.s32 1, %s1209_s13  ;;  %s90_s18 = sadd.s32 1, %s1201_s11 }
   0x6   : > { %p29_p0 = scmp.ge.s32.totalorder %s27_s17, 4  ;;  %p100_p1 = scmp.ne.s32.totalorder %s1201_s11, %s1197_s10 }
   0x7   : > { %p101_p2 = scmp.eq.s32.totalorder %s1041_s15, 3  ;;  %p106_p3 = scmp.ne.s32.totalorder %s1197_s10, %s1193_s9 }
   0x8   : > { %s1452_s17 = smov (%p29_p0, %s27_s17), 0  ;;  %p107_p5 = scmp.eq.s32.totalorder %s1042_s16, 3 }
   0x9   : > { %p1274_p4 = por %p101_p2, %p100_p1  ;;  %s85_s20 = ssub.s32 %s1209_s13, %s1452_s17 }
   0xa   : > { %p1045_p6 = scmp.ge.s32.totalorder %s1213_s14, 1  ;;  %p88_p7 = scmp.eq.s32.totalorder %s85_s20, 0 }
   0xb   : > { %p1281_p8 = por %p107_p5, %p106_p3  ;;  %p150_p9 = scmp.lt.s32.totalorder %s1213_s14, 5 }
   0xc   : > { %s1287_s22 = scalar_select %p88_p7, %s1201_s11, %s90_s18  }
   0xd   : > { %p151_p10 = pnand %p1045_p6, %p150_p9 }
   0xe   : > { %s1047_s23 = sshll.u32 (!%p151_p10), %s1205_s12, 3  ;;  %s180_s3 = sand.u32 (!%p151_p10), 1, %s1197_s10  }
   0xf   : > { %154 = sbr.rel (%p151_p10) target bundleno = 265 (0x109), region = 28  ;;  %p184_p11 = scmp.lt.s32.totalorder (!%p151_p10), %s1047_s23, 31 }
  0x10   : > { %s1046_s4 = sshll.u32 (!%p151_p10), %s180_s3, 7  ;;  %s1078_s6 = sshll.u32 (!%p151_p10), %s1205_s12, 11 }
  0x11   : > { %s1367_s5 = scalar_lea.vmem (!%p151_p10), [#allocation2], %s1046_s4  ;;  %s1386_s16 = scalar_lea.hbm (!%p151_p10), %s1443_s2, %s1078_s6 }
  0x12   : > { %s950_s7 = sshll.u32 (!%p151_p10), %s1367_s5, 4  ;;  %s1396_s12 = scalar_lea.sflag (!%p151_p10), [#allocation3], %s180_s3  ;;  %s1388_s7 = int_to_ptr.vmem [resolvable:$true] %s950_s7 }
  0x13   : > { %s1137_s18 = scalar_lea.vmem (!%p151_p10), %s1388_s7, 2048  ;;  %s1216_s20 = smov (!%p151_p10), [#allocation2]  }
  0x14   : > { %v1215_v0 = vmov 0.0   ;;  %s1454_s23 = smov (!%p184_p11, %s1047_s23), 31  ;;  %vm236_vm0 = vcmask 64512   ;;  %p1138_p12 = scmp.ne.s32.totalorder %s1388_s7, %s1137_s18 }
  0x15   : > { %307 = vmatprep.mubr.f32.mxu0 %v1215_v0  ;;  %390 = vmatprep.mubr.f32.mxu1 %v1215_v0  ;;  %s1075_s24 = sshll.u32 %s1454_s23, 4  ;;  %s1141_s23 = sshll.u32 %s1216_s20, 4  ;;  %s1142_s23 = int_to_ptr.vmem [resolvable:$false] %s1141_s23 }
  0x16   : > { %s1295_s27 = scalar_lea.vmem %s1441_s0, %s1075_s24  ;;  %s1300_s30 = scalar_lea.vmem %s1442_s1, %s1075_s24 }
  0x17   : > { %v221_v1 = vld [vmem:[%s1300_s30 + $0x8] sm:$0xff]  ;;  %v223_v2 = vld [vmem:[%s1300_s30 + $0x18] sm:$0xff]  ;;  %v220_v3 = vld [vmem:[%s1300_s30] sm:$0xff]  ;;  %p1139_p13 = pnand %p1138_p12, %p1274_p4  ;;  %s1143_s24 = scalar_lea.vmem %s1142_s23, 4096 }
  0x18   : > { %273 = vmatprep.subr.mxu0 %v221_v1  ;;  %356 = vmatprep.subr.mxu1 %v223_v2  ;;  %v222_v4 = vld [vmem:[%s1300_s30 + $0x10] sm:$0xff]  ;;  %v204_v5 = vld [vmem:[%s1295_s27] sm:$0xff]  ;;  %v225_v7 = vld [vmem:[%s1300_s30 + $0x28] sm:$0xff]  ;;  %p1144_p1 = scmp.lt.s32.totalorder %s1388_s7, %s1142_s23  ;;  %p1145_p2 = scmp.lt.s32.totalorder %s1143_s24, %s1137_s18 }
  0x19   : > { %v206_v6 = vld [vmem:[%s1295_s27 + $0x10] sm:$0xff]  ;;  %274 = vmatpush1.msra.mxu0 %v220_v3  ;;  %357 = vmatpush1.msra.mxu1 %v222_v4  ;;  %v227_v8 = vld [vmem:[%s1300_s30 + $0x38] sm:$0xff]  ;;  %v224_v9 = vld [vmem:[%s1300_s30 + $0x20] sm:$0xff]  ;;  %p1140_p0 = pneg %p1139_p13 }
  0x1a   : > { %1053 = vmatmul.mubr.msk.f32.vlgmr.msra.gmra.mxu0 %vm236_vm0, %v204_v5  ;;  %1055 = vmatmul.mubr.msk.f32.vlgmr.msra.gmra.mxu1 %vm236_vm0, %v206_v6  ;;  %v226_v10 = vld [vmem:[%s1300_s30 + $0x30] sm:$0xff]  ;;  %v205_v11 = vld [vmem:[%s1295_s27 + $0x8] sm:$0xff]  ;;  %v207_v12 = vld [vmem:[%s1295_s27 + $0x18] sm:$0xff]  ;;  %p1146_p3 = por %p1145_p2, %p1144_p1 }
  0x1b   : > { %439 = vmatprep.subr.mxu0 %v225_v7  ;;  %522 = vmatprep.subr.mxu1 %v227_v8  ;;  %v229_v13 = vld [vmem:[%s1300_s30 + $0x48] sm:$0xff]  ;;  %v231_v14 = vld [vmem:[%s1300_s30 + $0x58] sm:$0xff]  ;;  %v208_v15 = vld [vmem:[%s1295_s27 + $0x20] sm:$0xff] }
  0x1c   : > { %440 = vmatpush1.msra.mxu0 %v224_v9  ;;  %523 = vmatpush1.msra.mxu1 %v226_v10  ;;  %v210_v16 = vld [vmem:[%s1295_s27 + $0x30] sm:$0xff]  ;;  %v228_v17 = vld [vmem:[%s1300_s30 + $0x40] sm:$0xff]  ;;  %v233_v19 = vld [vmem:[%s1300_s30 + $0x68] sm:$0xff]  ;;  %p1147_p5 = pnand %p1146_p3, %p1140_p0 }
  0x1d   : > { %313 = vmatprep.mubr.f32.mxu0 %v1215_v0  ;;  %396 = vmatprep.mubr.f32.mxu1 %v1215_v0  ;;  %v230_v18 = vld [vmem:[%s1300_s30 + $0x50] sm:$0xff]  ;;  %v235_v20 = vld [vmem:[%s1300_s30 + $0x78] sm:$0xff]  ;;  %v209_v21 = vld [vmem:[%s1295_s27 + $0x28] sm:$0xff] }
  0x1e   : > { %1054 = vmatmul.mubr.msk.f32.gmra.mxu0 %vm236_vm0, %v205_v11  ;;  %1056 = vmatmul.mubr.msk.f32.gmra.mxu1 %vm236_vm0, %v207_v12  ;;  %v211_v22 = vld [vmem:[%s1295_s27 + $0x38] sm:$0xff]  ;;  %v212_v23 = vld [vmem:[%s1295_s27 + $0x40] sm:$0xff]  ;;  %v214_v24 = vld [vmem:[%s1295_s27 + $0x50] sm:$0xff] }
  0x1f   : > { %473 = vmatprep.mubr.f32.mxu0 %v1215_v0  ;;  %556 = vmatprep.mubr.f32.mxu1 %v1215_v0  ;;  %v232_v25 = vld [vmem:[%s1300_s30 + $0x60] sm:$0xff]  ;;  %v234_v26 = vld [vmem:[%s1300_s30 + $0x70] sm:$0xff]  ;;  %v213_v27 = vld [vmem:[%s1295_s27 + $0x48] sm:$0xff] }
  0x20   : > { %605 = vmatprep.subr.mxu0 %v229_v13  ;;  %688 = vmatprep.subr.mxu1 %v231_v14  ;;  %v215_v28 = vld [vmem:[%s1295_s27 + $0x58] sm:$0xff]  ;;  %v216_v29 = vld [vmem:[%s1295_s27 + $0x60] sm:$0xff]  ;;  %v218_v30 = vld [vmem:[%s1295_s27 + $0x70] sm:$0xff] }
  0x21   : > { %v217_v31 = vld [vmem:[%s1295_s27 + $0x68] sm:$0xff]  ;;  %v219_v32 = vld [vmem:[%s1295_s27 + $0x78] sm:$0xff] }
  0x22   : > { %1057 = vmatmul.mubr.msk.f32.vlgmr.msra.gmra.mxu0 %vm236_vm0, %v208_v15  ;;  %1059 = vmatmul.mubr.msk.f32.vlgmr.msra.gmra.mxu1 %vm236_vm0, %v210_v16 }
  0x23   : > { %606 = vmatpush1.msra.mxu0 %v228_v17  ;;  %689 = vmatpush1.msra.mxu1 %v230_v18 }
  0x24   : > { %479 = vmatprep.mubr.f32.mxu0 %v1215_v0  ;;  %562 = vmatprep.mubr.f32.mxu1 %v1215_v0 }
  0x25   : > { %771 = vmatprep.subr.mxu0 %v233_v19  ;;  %854 = vmatprep.subr.mxu1 %v235_v20 }
  0x26   : > { %1058 = vmatmul.mubr.msk.f32.gmra.mxu0 %vm236_vm0, %v209_v21  ;;  %1060 = vmatmul.mubr.msk.f32.gmra.mxu1 %vm236_vm0, %v211_v22 }
  0x27   : > { %639 = vmatprep.mubr.f32.mxu0 %v1215_v0  ;;  %722 = vmatprep.mubr.f32.mxu1 %v1215_v0 }
  0x2a   : > { %1061 = vmatmul.mubr.msk.f32.vlgmr.msra.gmra.mxu0 %vm236_vm0, %v212_v23  ;;  %1063 = vmatmul.mubr.msk.f32.vlgmr.msra.gmra.mxu1 %vm236_vm0, %v214_v24 }
  0x2b   : > { %772 = vmatpush1.msra.mxu0 %v232_v25  ;;  %855 = vmatpush1.msra.mxu1 %v234_v26 }
  0x2c   : > { %645 = vmatprep.mubr.f32.mxu0 %v1215_v0  ;;  %728 = vmatprep.mubr.f32.mxu1 %v1215_v0 }
  0x2e   : > { %1062 = vmatmul.mubr.msk.f32.gmra.mxu0 %vm236_vm0, %v213_v27  ;;  %1064 = vmatmul.mubr.msk.f32.gmra.mxu1 %vm236_vm0, %v215_v28 }
  0x2f   : > { %805 = vmatprep.mubr.f32.mxu0 %v1215_v0  ;;  %888 = vmatprep.mubr.f32.mxu1 %v1215_v0 }
  0x32   : > { %1065 = vmatmul.mubr.msk.f32.vlgmr.msra.gmra.mxu0 %vm236_vm0, %v216_v29  ;;  %1067 = vmatmul.mubr.msk.f32.vlgmr.msra.gmra.mxu1 %vm236_vm0, %v218_v30 }
  0x33   : > { %811 = vmatprep.mubr.f32.mxu0 %v1215_v0  ;;  %894 = vmatprep.mubr.f32.mxu1 %v1215_v0 }
  0x36   : > { %1066 = vmatmul.mubr.msk.f32.gmra.mxu0 %vm236_vm0, %v217_v31  ;;  %1068 = vmatmul.mubr.msk.f32.gmra.mxu1 %vm236_vm0, %v219_v32 }
  0xda   : > { %v309_v33 = vpop.f32.mrf.mxu0  ;;  %v392_v34 = vpop.f32.mrf.mxu1 }
  0xdc   : > { %v311_v35 = vpop.f32.mrf.mxu0  ;;  %v394_v36 = vpop.f32.mrf.mxu1 }
  0xde   : > { %v315_v37 = vpop.f32.mrf.mxu0  ;;  %v398_v38 = vpop.f32.mrf.mxu1 }
  0xdf   : > { %v909_v39 = vadd.f32 %v315_v37, %v311_v35  ;;  %v910_v40 = vadd.f32 %v398_v38, %v394_v36 }
  0xe0   : > { %v317_v41 = vpop.f32.mrf.mxu0  ;;  %v400_v42 = vpop.f32.mrf.mxu1 }
  0xe1   : > { %918 = vst [vmem:[%s1367_s5 + $0x8] sm:$0xff] %v909_v39  ;;  %920 = vst [vmem:[%s1367_s5 + $0x18] sm:$0xff] %v910_v40  ;;  %v901_v43 = vsub.f32 %v309_v33, %v317_v41  ;;  %v902_v44 = vsub.f32 %v392_v34, %v400_v42 }
  0xe2   : > { %v475_v45 = vpop.f32.mrf.mxu0  ;;  %v558_v46 = vpop.f32.mrf.mxu1 }
  0xe3   : > { %917 = vst [vmem:[%s1367_s5] sm:$0xff] %v901_v43  ;;  %919 = vst [vmem:[%s1367_s5 + $0x10] sm:$0xff] %v902_v44 }
  0xe4   : > { %v477_v47 = vpop.f32.mrf.mxu0  ;;  %v560_v48 = vpop.f32.mrf.mxu1 }
  0xe6   : > { %v481_v49 = vpop.f32.mrf.mxu0  ;;  %v564_v50 = vpop.f32.mrf.mxu1 }
  0xe7   : > { %v911_v51 = vadd.f32 %v481_v49, %v477_v47  ;;  %v912_v52 = vadd.f32 %v564_v50, %v560_v48 }
  0xe8   : > { %v483_v53 = vpop.f32.mrf.mxu0  ;;  %v566_v54 = vpop.f32.mrf.mxu1 }
  0xe9   : > { %922 = vst [vmem:[%s1367_s5 + $0x28] sm:$0xff] %v911_v51  ;;  %924 = vst [vmem:[%s1367_s5 + $0x38] sm:$0xff] %v912_v52  ;;  %v903_v55 = vsub.f32 %v475_v45, %v483_v53  ;;  %v904_v56 = vsub.f32 %v558_v46, %v566_v54 }
  0xea   : > { %v641_v57 = vpop.f32.mrf.mxu0  ;;  %v724_v58 = vpop.f32.mrf.mxu1 }
  0xeb   : > { %921 = vst [vmem:[%s1367_s5 + $0x20] sm:$0xff] %v903_v55  ;;  %923 = vst [vmem:[%s1367_s5 + $0x30] sm:$0xff] %v904_v56 }
  0xec   : > { %v643_v59 = vpop.f32.mrf.mxu0  ;;  %v726_v60 = vpop.f32.mrf.mxu1 }
  0xee   : > { %v647_v61 = vpop.f32.mrf.mxu0  ;;  %v730_v62 = vpop.f32.mrf.mxu1 }
  0xef   : > { %v913_v63 = vadd.f32 %v647_v61, %v643_v59  ;;  %v914_v0 = vadd.f32 %v730_v62, %v726_v60 }
  0xf0   : > { %v649_v1 = vpop.f32.mrf.mxu0  ;;  %v732_v2 = vpop.f32.mrf.mxu1 }
  0xf1   : > { %926 = vst [vmem:[%s1367_s5 + $0x48] sm:$0xff] %v913_v63  ;;  %928 = vst [vmem:[%s1367_s5 + $0x58] sm:$0xff] %v914_v0  ;;  %v905_v3 = vsub.f32 %v641_v57, %v649_v1  ;;  %v906_v4 = vsub.f32 %v724_v58, %v732_v2 }
  0xf2   : > { %v807_v5 = vpop.f32.mrf.mxu0  ;;  %v890_v6 = vpop.f32.mrf.mxu1 }
  0xf3   : > { %925 = vst [vmem:[%s1367_s5 + $0x40] sm:$0xff] %v905_v3  ;;  %927 = vst [vmem:[%s1367_s5 + $0x50] sm:$0xff] %v906_v4 }
  0xf4   : > { %v809_v7 = vpop.f32.mrf.mxu0  ;;  %v892_v8 = vpop.f32.mrf.mxu1 }
  0xf6   : > { %v813_v9 = vpop.f32.mrf.mxu0  ;;  %v896_v10 = vpop.f32.mrf.mxu1 }
  0xf7   : > { %v915_v11 = vadd.f32 %v813_v9, %v809_v7  ;;  %v916_v12 = vadd.f32 %v896_v10, %v892_v8 }
  0xf8   : > { %v815_v13 = vpop.f32.mrf.mxu0  ;;  %v898_v14 = vpop.f32.mrf.mxu1 }
  0xf9   : > { %930 = vst [vmem:[%s1367_s5 + $0x68] sm:$0xff] %v915_v11  ;;  %932 = vst [vmem:[%s1367_s5 + $0x78] sm:$0xff] %v916_v12  ;;  %v907_v15 = vsub.f32 %v807_v5, %v815_v13  ;;  %v908_v16 = vsub.f32 %v890_v6, %v898_v14 }
  0xfb   : > { %929 = vst [vmem:[%s1367_s5 + $0x60] sm:$0xff] %v907_v15  ;;  %931 = vst [vmem:[%s1367_s5 + $0x70] sm:$0xff] %v908_v16 }
  0xfc   : > { %1150 = shalt.err (!%p1147_p5)
}
  0xfd   : > { %s1151_s25 = scalar_lea.hbm %s1386_s16, 2048  ;;  %s1155_s28 = scalar_lea.hbm %s1443_s2, 8192 }
  0xfe   : > { %p1152_p6 = scmp.ne.s32.totalorder %s1386_s16, %s1151_s25  ;;  %p1156_p10 = scmp.lt.s32.totalorder %s1386_s16, %s1443_s2 }
  0xff   : > { %p1157_p11 = scmp.lt.s32.totalorder %s1155_s28, %s1151_s25 }
 0x100   : > { %p1153_p7 = pnand %p1152_p6, %p1274_p4 }
 0x101   : > { %p1158_p12 = por %p1157_p11, %p1156_p10 }
 0x102   : > { %p1154_p9 = pneg %p1153_p7 }
 0x104   : > { %p1159_p13 = pnand %p1158_p12, %p1154_p9 }
 0x106   : > { %1162 = shalt.err (!%p1159_p13)
}
 0x107   : > { %s1217_s3 = smov 256   ;;  %s1218_s4 = smov 16  }
 0x108   : > { %1079 = dma.vmem_to_hbm [thread:$0]  (%p1274_p4), %s1388_s7, 2048, %s1386_s16, %s1396_s12, %s1217_s3, %s1217_s3, %s1218_s4  }
 0x109 PF: > { %p1085_p0 = scmp.ge.s32.totalorder %s1213_s14, 2  ;;  %s965_s5 = sand.u32 1, %s1193_s9  }
 0x10a   : > { %s966_s6 = scalar_lea.sflag [#allocation3], %s965_s5 }
 0x10b   : > { %p1082_p1 = pnand %p1085_p0, %p1281_p8 }
 0x10d   : > { %p1083_p2 = pneg %p1082_p1 }
 0x10f   : > { %1188 = dma.done.wait (%p1083_p2), %s966_s6, 2048  }
 0x110   : > { %1190 = vsyncadd (%p1083_p2), %s966_s6, 4294965248  ;;  %s15_s14 = sadd.s32 1, %s1213_s14   ;;  %s1446_s9 = smov %s1197_s10 }
 0x111   : > { %p12_p3 = scmp.ge.s32.totalorder %s15_s14, 6   ;;  %s1447_s10 = smov %s1201_s11 }
 0x112   : > { %s1448_s11 = smov %s1287_s22  ;;  %s1449_s12 = smov %s1209_s13 }
 0x113   : > { %s1450_s13 = smov %s1452_s17  ;;  %14 = sbr.rel (!%p12_p3) target bundleno = 4 (0x4), region = 66 }
 0x118   :  { %971 = vsyncpa [#allocation3], 1 }
 0x119   :  { %973 = vsyncpa [#allocation3 + $0x1], 1 }

</bundles_post_ra>
